<compile_context>
chip_gen: v5e
topology: v5e:2x2
jax: 0.10.0
libtpu: 0.0.40
codegen_flags: <defaults>
</compile_context>

<pallas_src>
import jax
import jax.numpy as jnp
from jax.experimental import pallas as pl
from jax.experimental.pallas import tpu as pltpu

HIDDEN = 1024          # fixed by the module definition
MAX_BATCH_TILE = 512   # rows per grid step (VMEM-safe on v5e/v6e/v7x)


def _round_up(n, m):
    return ((n + m - 1) // m) * m


def _pad_axis(a, axis, target):
    pad = target - a.shape[axis]
    if pad == 0:
        return a
    widths = [(0, 0)] * a.ndim
    widths[axis] = (0, pad)
    return jnp.pad(a, widths)


def _game_net_kernel(x_ref, w1_ref, b1_ref, w2_ref, b2_ref, o_ref):
    # feature = x @ W1 + b1  (bf16 MXU matmul, f32 accumulate)
    h = jnp.dot(x_ref[...], w1_ref[...], preferred_element_type=jnp.float32)
    # bias add + ReLU in f32 on the VPU (hidden under the second matmul)
    h = jnp.maximum(h + b1_ref[...], 0.0)
    # pred_action = relu(feature) @ W2 + b2 (downcast activation to bf16)
    out = jnp.dot(h.astype(w2_ref.dtype), w2_ref[...],
                  preferred_element_type=jnp.float32)
    o_ref[...] = (out + b2_ref[...]).astype(o_ref.dtype)


def game_network_forward(x, w1, b1, w2, b2):
    """Forward pass of GameNetwork.

    x:  (B, OBS)      float32
    w1: (OBS, 1024)   (already transposed to (in, out))
    b1: (1024,)
    w2: (1024, A)
    b2: (A,)
    returns (B, A) in x.dtype
    """
    B, obs = x.shape
    hidden = w1.shape[1]
    act = w2.shape[1]

    # --- lane / sublane padding -------------------------------------------
    obs_p = _round_up(obs, 128)       # lane-dense x loads, full MXU contraction
    act_p = _round_up(act, 128)       # lane-dense output stores (no vst.msk)
    b_min = _round_up(B, 8)           # sublane alignment

    if b_min <= MAX_BATCH_TILE:
        tb = b_min
        b_pad = b_min
    else:
        tb = MAX_BATCH_TILE
        b_pad = _round_up(B, tb)
    num_tiles = b_pad // tb

    # --- wrapper-side casts / pads ----------------------------------------
    x_p = _pad_axis(_pad_axis(x, 1, obs_p), 0, b_pad).astype(jnp.bfloat16)
    w1_p = _pad_axis(w1, 0, obs_p).astype(jnp.bfloat16)           # (obs_p, H)
    w2_p = _pad_axis(w2, 1, act_p).astype(jnp.bfloat16)           # (H, act_p)
    b1_2d = b1.reshape(1, hidden).astype(jnp.float32)             # (1, H)
    b2_2d = _pad_axis(b2.reshape(1, act), 1, act_p).astype(jnp.float32)

    # --- cost hint for XLA scheduling --------------------------------------
    flops = 2 * b_pad * (obs_p * hidden + hidden * act_p)
    bytes_accessed = (x_p.size * 2 + w1_p.size * 2 + w2_p.size * 2
                      + b1_2d.size * 4 + b2_2d.size * 4
                      + b_pad * act_p * 4)
    cost = pl.CostEstimate(flops=flops, transcendentals=0,
                           bytes_accessed=bytes_accessed)

    out_padded = pl.pallas_call(
        _game_net_kernel,
        out_shape=jax.ShapeDtypeStruct((b_pad, act_p), jnp.float32),
        grid=(num_tiles,),
        in_specs=[
            pl.BlockSpec((tb, obs_p), lambda i: (i, 0)),      # x: moves w/ grid
            pl.BlockSpec((obs_p, hidden), lambda i: (0, 0)),  # W1: resident
            pl.BlockSpec((1, hidden), lambda i: (0, 0)),      # b1: resident
            pl.BlockSpec((hidden, act_p), lambda i: (0, 0)),  # W2: resident
            pl.BlockSpec((1, act_p), lambda i: (0, 0)),       # b2: resident
        ],
        out_specs=pl.BlockSpec((tb, act_p), lambda i: (i, 0)),
        compiler_params=pltpu.CompilerParams(
            dimension_semantics=("parallel",)),
        cost_estimate=cost,
    )(x_p, w1_p, b1_2d, w2_p, b2_2d)

    return out_padded[:B, :act].astype(x.dtype)


def init_params(key, obs_shape, action_shape, dtype=jnp.float32):
    """PyTorch-style U(-1/sqrt(fan_in), +1/sqrt(fan_in)) init.

    Returns weights already transposed to (in, out) for the kernel.
    """
    k1, k2, k3, k4 = jax.random.split(key, 4)
    bound1 = 1.0 / jnp.sqrt(jnp.asarray(obs_shape, jnp.float32))
    bound2 = 1.0 / jnp.sqrt(jnp.asarray(HIDDEN, jnp.float32))
    w1 = jax.random.uniform(k1, (obs_shape, HIDDEN), dtype, -bound1, bound1)
    b1 = jax.random.uniform(k2, (HIDDEN,), dtype, -bound1, bound1)
    w2 = jax.random.uniform(k3, (HIDDEN, action_shape), dtype, -bound2, bound2)
    b2 = jax.random.uniform(k4, (action_shape,), dtype, -bound2, bound2)
    return w1, b1, w2, b2


if __name__ == "__main__":
    OBS_SHAPE = 32
    ACTION_SHAPE = 8
    BATCH = 8

    key = jax.random.PRNGKey(0)
    kx, kp = jax.random.split(key)
    x = jax.random.normal(kx, (BATCH, OBS_SHAPE), dtype=jnp.float32)
    w1, b1, w2, b2 = init_params(kp, OBS_SHAPE, ACTION_SHAPE)

    out = game_network_forward(x, w1, b1, w2, b2)
    out = jax.block_until_ready(out)
    assert out.shape == (BATCH, ACTION_SHAPE)

    # Reference 1: same mixed precision (bf16 matmul, f32 accumulate) -> tight.
    xb = x.astype(jnp.bfloat16)
    w1b = w1.astype(jnp.bfloat16)
    w2b = w2.astype(jnp.bfloat16)
    h_ref = jnp.maximum(
        jnp.dot(xb, w1b, preferred_element_type=jnp.float32) + b1, 0.0)
    ref_bf16 = jnp.dot(h_ref.astype(jnp.bfloat16), w2b,
                       preferred_element_type=jnp.float32) + b2
    assert jnp.allclose(out, ref_bf16, atol=1e-4, rtol=1e-4)

    # Reference 2: full-f32 semantics of the original module -> loose bound.
    ref_f32 = jnp.maximum(x @ w1 + b1, 0.0) @ w2 + b2
    assert jnp.allclose(out, ref_f32, atol=5e-2, rtol=5e-2)

    print("KERNEL_OK")
</pallas_src>

<mosaic_0001>
module attributes {stable_mosaic.version = 11 : i64} {
  func.func @_game_net_kernel(%arg0: i32, %arg1: memref<8x128xbf16, #tpu.memory_space<vmem>>, %arg2: memref<128x1024xbf16, #tpu.memory_space<vmem>>, %arg3: memref<1x1024xf32, #tpu.memory_space<vmem>>, %arg4: memref<1024x128xbf16, #tpu.memory_space<vmem>>, %arg5: memref<1x128xf32, #tpu.memory_space<vmem>>, %arg6: memref<8x128xf32, #tpu.memory_space<vmem>>) attributes {dimension_semantics = [#tpu.dimension_semantics<parallel>], iteration_bounds = array<i64: 1>, scalar_prefetch = 0 : i64, scratch_operands = 0 : i64, tpu.core_type = #tpu.core_type<tc>, window_params = [{transform_indices = @transform_0, window_bounds = array<i64: 8, 128>}, {pipeline_mode = #tpu.pipeline_mode<synchronous>, transform_indices = @transform_1, window_bounds = array<i64: 128, 1024>}, {pipeline_mode = #tpu.pipeline_mode<synchronous>, transform_indices = @transform_2, window_bounds = array<i64: 1, 1024>}, {pipeline_mode = #tpu.pipeline_mode<synchronous>, transform_indices = @transform_3, window_bounds = array<i64: 1024, 128>}, {pipeline_mode = #tpu.pipeline_mode<synchronous>, transform_indices = @transform_4, window_bounds = array<i64: 1, 128>}, {transform_indices = @transform_5, window_bounds = array<i64: 8, 128>}]} {
    %c0 = arith.constant 0 : index
    %c0_0 = arith.constant 0 : index
    %0 = vector.load %arg1[%c0, %c0_0] : memref<8x128xbf16, #tpu.memory_space<vmem>>, vector<8x128xbf16>
    %c0_1 = arith.constant 0 : index
    %c0_2 = arith.constant 0 : index
    %1 = vector.load %arg2[%c0_1, %c0_2] : memref<128x1024xbf16, #tpu.memory_space<vmem>>, vector<128x1024xbf16>
    %cst = arith.constant dense<0.000000e+00> : vector<8x1024xf32>
    %2 = tpu.matmul %0, %1, %cst {dimension_numbers = #tpu.dot_dimension_numbers<[1], [0], [0], [1], [0, 0, 1, 1], [], []>} : vector<8x128xbf16>, vector<128x1024xbf16>, vector<8x1024xf32> -> vector<8x1024xf32>
    %c0_3 = arith.constant 0 : index
    %c0_4 = arith.constant 0 : index
    %3 = vector.load %arg3[%c0_3, %c0_4] : memref<1x1024xf32, #tpu.memory_space<vmem>>, vector<1x1024xf32>
    %4 = vector.broadcast %3 : vector<1x1024xf32> to vector<8x1024xf32>
    %5 = arith.addf %2, %4 : vector<8x1024xf32>
    %cst_5 = arith.constant 0.000000e+00 : f32
    %6 = vector.broadcast %cst_5 : f32 to vector<8x1024xf32>
    %7 = arith.maximumf %5, %6 : vector<8x1024xf32>
    %8 = arith.truncf %7 : vector<8x1024xf32> to vector<8x1024xbf16>
    %c0_6 = arith.constant 0 : index
    %c0_7 = arith.constant 0 : index
    %9 = vector.load %arg4[%c0_6, %c0_7] : memref<1024x128xbf16, #tpu.memory_space<vmem>>, vector<1024x128xbf16>
    %cst_8 = arith.constant dense<0.000000e+00> : vector<8x128xf32>
    %10 = tpu.matmul %8, %9, %cst_8 {dimension_numbers = #tpu.dot_dimension_numbers<[1], [0], [0], [1], [0, 0, 1, 1], [], []>} : vector<8x1024xbf16>, vector<1024x128xbf16>, vector<8x128xf32> -> vector<8x128xf32>
    %c0_9 = arith.constant 0 : index
    %c0_10 = arith.constant 0 : index
    %11 = vector.load %arg5[%c0_9, %c0_10] : memref<1x128xf32, #tpu.memory_space<vmem>>, vector<1x128xf32>
    %12 = vector.broadcast %11 : vector<1x128xf32> to vector<8x128xf32>
    %13 = arith.addf %10, %12 : vector<8x128xf32>
    %c0_11 = arith.constant 0 : index
    %c0_12 = arith.constant 0 : index
    %14 = vector.load %arg6[%c0_11, %c0_12] : memref<8x128xf32, #tpu.memory_space<vmem>>, vector<8x128xf32>
    tpu.vector_store %arg6[%c0_11, %c0_12], %13 {strides = array<i32>} : memref<8x128xf32, #tpu.memory_space<vmem>>, vector<8x128xf32>,
    return
  }
  func.func @transform_0(%arg0: i32) -> (i32, i32) {
    %c0_i32 = arith.constant 0 : i32
    %c0_i32_0 = arith.constant 0 : i32
    return %arg0, %c0_i32 : i32, i32
  }
  func.func @transform_1(%arg0: i32) -> (i32, i32) {
    %c0_i32 = arith.constant 0 : i32
    %c0_i32_0 = arith.constant 0 : i32
    %c0_i32_1 = arith.constant 0 : i32
    return %c0_i32, %c0_i32_0 : i32, i32
  }
  func.func @transform_2(%arg0: i32) -> (i32, i32) {
    %c0_i32 = arith.constant 0 : i32
    %c0_i32_0 = arith.constant 0 : i32
    %c0_i32_1 = arith.constant 0 : i32
    return %c0_i32, %c0_i32_0 : i32, i32
  }
  func.func @transform_3(%arg0: i32) -> (i32, i32) {
    %c0_i32 = arith.constant 0 : i32
    %c0_i32_0 = arith.constant 0 : i32
    %c0_i32_1 = arith.constant 0 : i32
    return %c0_i32, %c0_i32_0 : i32, i32
  }
  func.func @transform_4(%arg0: i32) -> (i32, i32) {
    %c0_i32 = arith.constant 0 : i32
    %c0_i32_0 = arith.constant 0 : i32
    %c0_i32_1 = arith.constant 0 : i32
    return %c0_i32, %c0_i32_0 : i32, i32
  }
  func.func @transform_5(%arg0: i32) -> (i32, i32) {
    %c0_i32 = arith.constant 0 : i32
    %c0_i32_0 = arith.constant 0 : i32
    return %arg0, %c0_i32 : i32, i32
  }
}

</mosaic_0001>

<bundles_post_ra>
// kernel: tpu_custom_call.1
= control target key start
LH: loop header
LB: loop body
LE: loop exit
PB: predicated region body
PF: predicated region fallthrough
CT: control target
= control target key end

     0   :  { %10 = vsyncpa [#allocation3], 0  ;;  %s2098_s0 = inlined_call_operand.hbm [shape: bf16[8,128], index: 0, kind: input, shape index: {}]   ;;  %s2099_s1 = inlined_call_operand.hbm [shape: bf16[128,1024], index: 1, kind: input, shape index: {}]   ;;  %s2100_s2 = inlined_call_operand.hbm [shape: f32[1,1024], index: 2, kind: input, shape index: {}]   ;;  %s2101_s3 = inlined_call_operand.hbm [shape: bf16[1024,128], index: 3, kind: input, shape index: {}]   ;;  %s2102_s4 = inlined_call_operand.vmem [shape: f32[1,128], index: 4, kind: input, shape index: {}]   ;;  %s2103_s5 = inlined_call_operand.hbm [shape: f32[8,128], index: 5, kind: output, shape index: {}]  }
   0x1   :  { %11 = vsyncpa [#allocation6], 0 }
   0x2   :  { %12 = vsyncpa [#allocation9], 0  ;;  %s29_s20 = sshll.u32 %s2099_s1, 4  ;;  %s30_s20 = int_to_ptr.hbm [resolvable:$true] %s29_s20 }
   0x3   :  { %13 = vsyncpa [#allocation4], 0  ;;  %s2021_s21 = smov [#allocation5]   ;;  %s19_s25 = sshll.u32 %s2098_s0, 4  ;;  %s20_s25 = int_to_ptr.hbm [resolvable:$true] %s19_s25 }
   0x4   :  { %s31_s22 = sshll.u32 %s2021_s21, 4  ;;  %s2022_s26 = smov 512   ;;  %s32_s22 = int_to_ptr.vmem [resolvable:$true] %s31_s22 }
   0x5   :  { %s2023_s27 = smov 32   ;;  %s2024_s28 = smov [#allocation2]  }
   0x6   :  { %37 = dma.hbm_to_vmem [thread:$0]  %s30_s20, 8192, %s32_s22, [#allocation6], %s2022_s26, %s2022_s26, %s2023_s27  }
   0x7   :  { %s21_s29 = sshll.u32 %s2024_s28, 4  ;;  %s43_s7 = sshll.u32 %s2100_s2, 4  ;;  %s22_s29 = int_to_ptr.vmem [resolvable:$true] %s21_s29  ;;  %s44_s7 = int_to_ptr.hbm [resolvable:$true] %s43_s7 }
   0x8   :  { %24 = dma.hbm_to_vmem [thread:$0]  %s20_s25, 64, %s22_s29, [#allocation3]  }
   0x9   :  { %s53_s9 = sshll.u32 %s2101_s3, 4  ;;  %s2025_s10 = smov [#allocation7]   ;;  %s54_s9 = int_to_ptr.hbm [resolvable:$true] %s53_s9 }
   0xa   :  { %s45_s11 = sshll.u32 %s2025_s10, 4  ;;  %s2026_s0 = smov [#allocation8]   ;;  %s46_s11 = int_to_ptr.vmem [resolvable:$true] %s45_s11 }
   0xb   :  { %48 = dma.hbm_to_vmem [thread:$0]  %s44_s7, 128, %s46_s11, [#allocation6]  }
   0xc   :  { %s55_s12 = sshll.u32 %s2026_s0, 4  ;;  %s2027_s13 = smov 64   ;;  %s56_s12 = int_to_ptr.vmem [resolvable:$true] %s55_s12 }
   0xd   :  { %s2028_s14 = smov 4  }
   0xe   :  { %61 = dma.hbm_to_vmem [thread:$0]  %s54_s9, 8192, %s56_s12, [#allocation9], %s2027_s13, %s2027_s13, %s2028_s14  }
   0xf   :  { %2013 = dma.done.wait [#allocation3], 64  }
  0x10   :  { %2014 = vsyncadd [#allocation3], 4294967232 }
  0x11   :  { %2015 = dma.done.wait [#allocation6], 8320  }
  0x12   :  { %2016 = vsyncadd [#allocation6], 4294958976 }
  0x13   :  { %2017 = dma.done.wait [#allocation9], 8192  }
  0x14   :  { %2018 = vsyncadd [#allocation9], 4294959104  ;;  %v1469_v0 = vld [vmem:[#allocation5 + $0x1c0] sm:$0xf]  ;;  %v1477_v2 = vld [vmem:[#allocation5 + $0x1c8] sm:$0xf] }
  0x15   :  { %v1815_v1 = vld [vmem:[#allocation5 + $0x1dc] sm:$0xf0]  ;;  %v1816_v4 = vld [vmem:[#allocation5 + $0x1e4] sm:$0xf0]  ;;  %v1812_v5 = vld [vmem:[#allocation5 + $0x1cc] sm:$0xf] }
  0x16   :  { %v1470_v3 = vor.u32 %v1815_v1, %v1469_v0  ;;  %v1479_v6 = vld [vmem:[#allocation5 + $0x1e8] sm:$0xf0]  ;;  %v1478_v7 = vor.u32 %v1816_v4, %v1477_v2  ;;  %v1811_v9 = vld [vmem:[#allocation5 + $0x1c4] sm:$0xf]  ;;  %v1437_v11 = vld [vmem:[#allocation5 + $0x180] sm:$0xf] }
  0x17   :  { %v1482_v8 = vor.u32 %v1812_v5, %v1479_v6  ;;  %v1471_v10 = vld [vmem:[#allocation5 + $0x1e0] sm:$0xf0]  ;;  %v1807_v13 = vld [vmem:[#allocation5 + $0x19c] sm:$0xf0]  ;;  %v1445_v14 = vld [vmem:[#allocation5 + $0x188] sm:$0xf] }
  0x18   :  { %483 = vmatpush.bf16.msra.mxu0 %v1470_v3  ;;  %v1474_v12 = vor.u32 %v1811_v9, %v1471_v10  ;;  %v1808_v15 = vld [vmem:[#allocation5 + $0x1a4] sm:$0xf0]  ;;  %509 = vmatpush.bf16.msra.mxu2 %v1478_v7  ;;  %v1438_v16 = vor.u32 %v1807_v13, %v1437_v11  ;;  %v1804_v18 = vld [vmem:[#allocation5 + $0x18c] sm:$0xf]  ;;  %v1803_v20 = vld [vmem:[#allocation5 + $0x184] sm:$0xf] }
  0x19   :  { %522 = vmatpush.bf16.msra.mxu3 %v1482_v8  ;;  %v1446_v17 = vor.u32 %v1808_v15, %v1445_v14  ;;  %v1447_v19 = vld [vmem:[#allocation5 + $0x1a8] sm:$0xf0]  ;;  %v1439_v22 = vld [vmem:[#allocation5 + $0x1a0] sm:$0xf0]  ;;  %v1405_v23 = vld [vmem:[#allocation5 + $0x140] sm:$0xf] }
  0x1a   :  { %496 = vmatpush.bf16.msra.mxu1 %v1474_v12  ;;  %v1450_v21 = vor.u32 %v1804_v18, %v1447_v19  ;;  %v1799_v24 = vld [vmem:[#allocation5 + $0x15c] sm:$0xf0]  ;;  %v1442_v25 = vor.u32 %v1803_v20, %v1439_v22  ;;  %v1413_v26 = vld [vmem:[#allocation5 + $0x148] sm:$0xf]  ;;  %v1796_v28 = vld [vmem:[#allocation5 + $0x14c] sm:$0xf] }
  0x1b   :  { %v1800_v27 = vld [vmem:[#allocation5 + $0x164] sm:$0xf0]  ;;  %v1406_v29 = vor.u32 %v1799_v24, %v1405_v23  ;;  %v1415_v30 = vld [vmem:[#allocation5 + $0x168] sm:$0xf0]  ;;  %v1795_v31 = vld [vmem:[#allocation5 + $0x144] sm:$0xf] }
  0x1c   :  { %484 = vmatpush.bf16.msra.mxu0 %v1438_v16  ;;  %v1407_v32 = vld [vmem:[#allocation5 + $0x160] sm:$0xf0]  ;;  %510 = vmatpush.bf16.msra.mxu2 %v1446_v17  ;;  %v1414_v33 = vor.u32 %v1800_v27, %v1413_v26  ;;  %v1418_v34 = vor.u32 %v1796_v28, %v1415_v30  ;;  %v1373_v35 = vld [vmem:[#allocation5 + $0x100] sm:$0xf]  ;;  %v1381_v37 = vld [vmem:[#allocation5 + $0x108] sm:$0xf] }
  0x1d   :  { %523 = vmatpush.bf16.msra.mxu3 %v1450_v21  ;;  %v1791_v36 = vld [vmem:[#allocation5 + $0x11c] sm:$0xf0]  ;;  %v1410_v38 = vor.u32 %v1795_v31, %v1407_v32  ;;  %v1792_v39 = vld [vmem:[#allocation5 + $0x124] sm:$0xf0]  ;;  %v1788_v40 = vld [vmem:[#allocation5 + $0x10c] sm:$0xf] }
  0x1e   :  { %497 = vmatpush.bf16.msra.mxu1 %v1442_v25  ;;  %v1383_v41 = vld [vmem:[#allocation5 + $0x128] sm:$0xf0]  ;;  %v1787_v42 = vld [vmem:[#allocation5 + $0x104] sm:$0xf]  ;;  %v1374_v44 = vor.u32 %v1791_v36, %v1373_v35  ;;  %v1382_v45 = vor.u32 %v1792_v39, %v1381_v37  ;;  %v1341_v47 = vld [vmem:[#allocation5 + $0xc0] sm:$0xf] }
  0x1f   :  { %v1375_v43 = vld [vmem:[#allocation5 + $0x120] sm:$0xf0]  ;;  %v1386_v46 = vor.u32 %v1788_v40, %v1383_v41  ;;  %v1783_v48 = vld [vmem:[#allocation5 + $0xdc] sm:$0xf0]  ;;  %v1349_v49 = vld [vmem:[#allocation5 + $0xc8] sm:$0xf] }
  0x20   :  { %485 = vmatpush.bf16.msra.mxu0 %v1406_v29  ;;  %511 = vmatpush.bf16.msra.mxu2 %v1414_v33  ;;  %v1378_v50 = vor.u32 %v1787_v42, %v1375_v43  ;;  %v1784_v51 = vld [vmem:[#allocation5 + $0xe4] sm:$0xf0]  ;;  %v1780_v52 = vld [vmem:[#allocation5 + $0xcc] sm:$0xf]  ;;  %v1779_v54 = vld [vmem:[#allocation5 + $0xc4] sm:$0xf]  ;;  %v1342_v56 = vor.u32 %v1783_v48, %v1341_v47 }
  0x21   :  { %524 = vmatpush.bf16.msra.mxu3 %v1418_v34  ;;  %v1351_v53 = vld [vmem:[#allocation5 + $0xe8] sm:$0xf0]  ;;  %v1343_v55 = vld [vmem:[#allocation5 + $0xe0] sm:$0xf0]  ;;  %v1350_v57 = vor.u32 %v1784_v51, %v1349_v49  ;;  %v1309_v59 = vld [vmem:[#allocation5 + $0x80] sm:$0xf] }
  0x22   :  { %498 = vmatpush.bf16.msra.mxu1 %v1410_v38  ;;  %v1354_v58 = vor.u32 %v1780_v52, %v1351_v53  ;;  %v1775_v60 = vld [vmem:[#allocation5 + $0x9c] sm:$0xf0]  ;;  %v1317_v61 = vld [vmem:[#allocation5 + $0x88] sm:$0xf]  ;;  %v1346_v62 = vor.u32 %v1779_v54, %v1343_v55  ;;  %v1772_v0 = vld [vmem:[#allocation5 + $0x8c] sm:$0xf] }
  0x23   :  { %v1776_v63 = vld [vmem:[#allocation5 + $0xa4] sm:$0xf0]  ;;  %v1319_v1 = vld [vmem:[#allocation5 + $0xa8] sm:$0xf0]  ;;  %v1771_v2 = vld [vmem:[#allocation5 + $0x84] sm:$0xf]  ;;  %v1310_v4 = vor.u32 %v1775_v60, %v1309_v59 }
  0x24   :  { %486 = vmatpush.bf16.msra.mxu0 %v1374_v44  ;;  %512 = vmatpush.bf16.msra.mxu2 %v1382_v45  ;;  %v1311_v3 = vld [vmem:[#allocation5 + $0xa0] sm:$0xf0]  ;;  %v1318_v5 = vor.u32 %v1776_v63, %v1317_v61  ;;  %v1322_v6 = vor.u32 %v1772_v0, %v1319_v1  ;;  %v1277_v7 = vld [vmem:[#allocation5 + $0x40] sm:$0xf]  ;;  %v1285_v9 = vld [vmem:[#allocation5 + $0x48] sm:$0xf] }
  0x25   :  { %525 = vmatpush.bf16.msra.mxu3 %v1386_v46  ;;  %v1767_v8 = vld [vmem:[#allocation5 + $0x5c] sm:$0xf0]  ;;  %v1314_v10 = vor.u32 %v1771_v2, %v1311_v3  ;;  %v1768_v11 = vld [vmem:[#allocation5 + $0x64] sm:$0xf0]  ;;  %v1764_v12 = vld [vmem:[#allocation5 + $0x4c] sm:$0xf] }
  0x26   :  { %499 = vmatpush.bf16.msra.mxu1 %v1378_v50  ;;  %v1287_v13 = vld [vmem:[#allocation5 + $0x68] sm:$0xf0]  ;;  %v1763_v14 = vld [vmem:[#allocation5 + $0x44] sm:$0xf]  ;;  %v1278_v16 = vor.u32 %v1767_v8, %v1277_v7  ;;  %v1245_v17 = vld [vmem:[#allocation5] sm:$0xf]  ;;  %v1286_v19 = vor.u32 %v1768_v11, %v1285_v9 }
  0x27   :  { %v1279_v15 = vld [vmem:[#allocation5 + $0x60] sm:$0xf0]  ;;  %v1759_v18 = vld [vmem:[#allocation5 + $0x1c] sm:$0xf0]  ;;  %v1290_v20 = vor.u32 %v1764_v12, %v1287_v13  ;;  %v1253_v21 = vld [vmem:[#allocation5 + $0x8] sm:$0xf] }
  0x28   :  { %487 = vmatpush.bf16.msra.mxu0 %v1342_v56  ;;  %513 = vmatpush.bf16.msra.mxu2 %v1350_v57  ;;  %v1760_v22 = vld [vmem:[#allocation5 + $0x24] sm:$0xf0]  ;;  %v1756_v23 = vld [vmem:[#allocation5 + $0xc] sm:$0xf]  ;;  %v1282_v24 = vor.u32 %v1763_v14, %v1279_v15  ;;  %v1485_v26 = vld [vmem:[#allocation5 + $0x1d0] sm:$0xf]  ;;  %v1246_v31 = vor.u32 %v1759_v18, %v1245_v17 }
  0x29   :  { %526 = vmatpush.bf16.msra.mxu3 %v1354_v58  ;;  %v1255_v25 = vld [vmem:[#allocation5 + $0x28] sm:$0xf0]  ;;  %v1817_v27 = vld [vmem:[#allocation5 + $0x1ec] sm:$0xf0]  ;;  %v1493_v28 = vld [vmem:[#allocation5 + $0x1d8] sm:$0xf]  ;;  %v1254_v35 = vor.u32 %v1760_v22, %v1253_v21 }
  0x2a   :  { %500 = vmatpush.bf16.msra.mxu1 %v1346_v62  ;;  %v1818_v29 = vld [vmem:[#allocation5 + $0x1f4] sm:$0xf0]  ;;  %v1814_v30 = vld [vmem:[#allocation5 + $0x1dc] sm:$0xf]  ;;  %v1755_v33 = vld [vmem:[#allocation5 + $0x4] sm:$0xf]  ;;  %v1258_v36 = vor.u32 %v1756_v23, %v1255_v25  ;;  %v1486_v39 = vor.u32 %v1817_v27, %v1485_v26 }
  0x2b   :  { %v1495_v32 = vld [vmem:[#allocation5 + $0x1f8] sm:$0xf0]  ;;  %v1247_v34 = vld [vmem:[#allocation5 + $0x20] sm:$0xf0]  ;;  %v1813_v37 = vld [vmem:[#allocation5 + $0x1d4] sm:$0xf]  ;;  %v1494_v40 = vor.u32 %v1818_v29, %v1493_v28 }
  0x2c   :  { %488 = vmatpush.bf16.msra.mxu0 %v1310_v4  ;;  %514 = vmatpush.bf16.msra.mxu2 %v1318_v5  ;;  %v1487_v38 = vld [vmem:[#allocation5 + $0x1f0] sm:$0xf0]  ;;  %v1453_v41 = vld [vmem:[#allocation5 + $0x190] sm:$0xf]  ;;  %v1498_v42 = vor.u32 %v1814_v30, %v1495_v32  ;;  %v1250_v43 = vor.u32 %v1755_v33, %v1247_v34  ;;  %v1461_v45 = vld [vmem:[#allocation5 + $0x198] sm:$0xf] }
  0x2d   :  { %527 = vmatpush.bf16.msra.mxu3 %v1322_v6  ;;  %v1809_v44 = vld [vmem:[#allocation5 + $0x1ac] sm:$0xf0]  ;;  %v1810_v46 = vld [vmem:[#allocation5 + $0x1b4] sm:$0xf0]  ;;  %v1490_v47 = vor.u32 %v1813_v37, %v1487_v38  ;;  %v1806_v48 = vld [vmem:[#allocation5 + $0x19c] sm:$0xf] }
  0x2e   :  { %501 = vmatpush.bf16.msra.mxu1 %v1314_v10  ;;  %v1463_v49 = vld [vmem:[#allocation5 + $0x1b8] sm:$0xf0]  ;;  %v1805_v50 = vld [vmem:[#allocation5 + $0x194] sm:$0xf]  ;;  %v1454_v53 = vor.u32 %v1809_v44, %v1453_v41  ;;  %v1462_v54 = vor.u32 %v1810_v46, %v1461_v45  ;;  %v1421_v55 = vld [vmem:[#allocation5 + $0x150] sm:$0xf] }
  0x2f   :  { %v1455_v51 = vld [vmem:[#allocation5 + $0x1b0] sm:$0xf0]  ;;  %v2072_v52 = vld [vmem:[#allocation2] sm:$0xf]  ;;  %v1466_v56 = vor.u32 %v1806_v48, %v1463_v49  ;;  %v1801_v57 = vld [vmem:[#allocation5 + $0x16c] sm:$0xf0] }
  0x30   :  { %489 = vmatpush.bf16.msra.mxu0 %v1278_v16  ;;  %515 = vmatpush.bf16.msra.mxu2 %v1286_v19  ;;  %v1429_v58 = vld [vmem:[#allocation5 + $0x158] sm:$0xf]  ;;  %v1458_v60 = vor.u32 %v1805_v50, %v1455_v51  ;;  %v1798_v61 = vld [vmem:[#allocation5 + $0x15c] sm:$0xf]  ;;  %v1797_v63 = vld [vmem:[#allocation5 + $0x154] sm:$0xf]  ;;  %v1422_v1 = vor.u32 %v1801_v57, %v1421_v55 }
  0x31   :  { %528 = vmatpush.bf16.msra.mxu3 %v1290_v20  ;;  %v1802_v59 = vld [vmem:[#allocation5 + $0x174] sm:$0xf0]  ;;  %v1431_v62 = vld [vmem:[#allocation5 + $0x178] sm:$0xf0]  ;;  %v1423_v0 = vld [vmem:[#allocation5 + $0x170] sm:$0xf0] }
  0x32   :  { %502 = vmatpush.bf16.msra.mxu1 %v1282_v24  ;;  %v1430_v2 = vor.u32 %v1802_v59, %v1429_v58  ;;  %v1389_v3 = vld [vmem:[#allocation5 + $0x110] sm:$0xf]  ;;  %v1434_v4 = vor.u32 %v1798_v61, %v1431_v62  ;;  %v1397_v6 = vld [vmem:[#allocation5 + $0x118] sm:$0xf]  ;;  %v1426_v8 = vor.u32 %v1797_v63, %v1423_v0  ;;  %v1790_v9 = vld [vmem:[#allocation5 + $0x11c] sm:$0xf] }
  0x33   :  { %v1793_v5 = vld [vmem:[#allocation5 + $0x12c] sm:$0xf0]  ;;  %v1794_v7 = vld [vmem:[#allocation5 + $0x134] sm:$0xf0]  ;;  %v1399_v10 = vld [vmem:[#allocation5 + $0x138] sm:$0xf0] }
  0x34   :  { %490 = vmatpush.bf16.msra.mxu0 %v1246_v31  ;;  %516 = vmatpush.bf16.msra.mxu2 %v1254_v35  ;;  %v1789_v11 = vld [vmem:[#allocation5 + $0x114] sm:$0xf]  ;;  %v1390_v13 = vor.u32 %v1793_v5, %v1389_v3  ;;  %v1398_v14 = vor.u32 %v1794_v7, %v1397_v6  ;;  %v1357_v15 = vld [vmem:[#allocation5 + $0xd0] sm:$0xf]  ;;  %v1402_v16 = vor.u32 %v1790_v9, %v1399_v10  ;;  %v1365_v18 = vld [vmem:[#allocation5 + $0xd8] sm:$0xf] }
  0x35   :  { %529 = vmatpush.bf16.msra.mxu3 %v1258_v36  ;;  %v1391_v12 = vld [vmem:[#allocation5 + $0x130] sm:$0xf0]  ;;  %v1785_v17 = vld [vmem:[#allocation5 + $0xec] sm:$0xf0]  ;;  %v1786_v19 = vld [vmem:[#allocation5 + $0xf4] sm:$0xf0] }
  0x36   :  { %503 = vmatpush.bf16.msra.mxu1 %v1250_v43  ;;  %v1394_v20 = vor.u32 %v1789_v11, %v1391_v12  ;;  %v1782_v21 = vld [vmem:[#allocation5 + $0xdc] sm:$0xf]  ;;  %v1781_v23 = vld [vmem:[#allocation5 + $0xd4] sm:$0xf]  ;;  %v1358_v25 = vor.u32 %v1785_v17, %v1357_v15  ;;  %v1366_v26 = vor.u32 %v1786_v19, %v1365_v18  ;;  %v1325_v27 = vld [vmem:[#allocation5 + $0x90] sm:$0xf] }
  0x37   :  { %517 = vmatmul.bf16.vlgmr.msra.gmra.mxu2 %v2072_v52  ;;  %491 = vmatmul.bf16.vlgmr.msra.gmra.mxu0 %v2072_v52  ;;  %v1367_v22 = vld [vmem:[#allocation5 + $0xf8] sm:$0xf0]  ;;  %v1359_v24 = vld [vmem:[#allocation5 + $0xf0] sm:$0xf0]  ;;  %v1777_v29 = vld [vmem:[#allocation5 + $0xac] sm:$0xf0] }
  0x38   :  { %535 = vmatpush.bf16.msrb.mxu0 %v1486_v39  ;;  %561 = vmatpush.bf16.msrb.mxu2 %v1494_v40  ;;  %v1370_v28 = vor.u32 %v1782_v21, %v1367_v22  ;;  %v1333_v30 = vld [vmem:[#allocation5 + $0x98] sm:$0xf]  ;;  %v1362_v32 = vor.u32 %v1781_v23, %v1359_v24  ;;  %v1774_v33 = vld [vmem:[#allocation5 + $0x9c] sm:$0xf]  ;;  %v1773_v35 = vld [vmem:[#allocation5 + $0x94] sm:$0xf]  ;;  %v1326_v37 = vor.u32 %v1777_v29, %v1325_v27 }
  0x39   :  { %574 = vmatpush.bf16.msrb.mxu3 %v1498_v42  ;;  %504 = vmatmul.bf16.vlgmr.msra.gmra.mxu1 %v2072_v52  ;;  %v1778_v31 = vld [vmem:[#allocation5 + $0xb4] sm:$0xf0]  ;;  %v1335_v34 = vld [vmem:[#allocation5 + $0xb8] sm:$0xf0]  ;;  %v1327_v36 = vld [vmem:[#allocation5 + $0xb0] sm:$0xf0] }
  0x3a   :  { %548 = vmatpush.bf16.msrb.mxu1 %v1490_v47  ;;  %530 = vmatmul.bf16.vlgmr.msra.gmra.mxu3 %v2072_v52  ;;  %v1334_v38 = vor.u32 %v1778_v31, %v1333_v30  ;;  %v1293_v39 = vld [vmem:[#allocation5 + $0x50] sm:$0xf]  ;;  %v1338_v40 = vor.u32 %v1774_v33, %v1335_v34  ;;  %v1301_v42 = vld [vmem:[#allocation5 + $0x58] sm:$0xf]  ;;  %v1330_v44 = vor.u32 %v1773_v35, %v1327_v36  ;;  %v1766_v45 = vld [vmem:[#allocation5 + $0x5c] sm:$0xf] }
  0x3b   :  { %v1769_v41 = vld [vmem:[#allocation5 + $0x6c] sm:$0xf0]  ;;  %v1770_v43 = vld [vmem:[#allocation5 + $0x74] sm:$0xf0]  ;;  %v1303_v46 = vld [vmem:[#allocation5 + $0x78] sm:$0xf0] }
  0x3c   :  { %536 = vmatpush.bf16.msrb.mxu0 %v1454_v53  ;;  %562 = vmatpush.bf16.msrb.mxu2 %v1462_v54  ;;  %v1765_v47 = vld [vmem:[#allocation5 + $0x54] sm:$0xf]  ;;  %v1294_v49 = vor.u32 %v1769_v41, %v1293_v39  ;;  %v1302_v50 = vor.u32 %v1770_v43, %v1301_v42  ;;  %v1261_v51 = vld [vmem:[#allocation5 + $0x10] sm:$0xf]  ;;  %v1306_v53 = vor.u32 %v1766_v45, %v1303_v46  ;;  %v1269_v55 = vld [vmem:[#allocation5 + $0x18] sm:$0xf] }
  0x3d   :  { %575 = vmatpush.bf16.msrb.mxu3 %v1466_v56  ;;  %v1295_v48 = vld [vmem:[#allocation5 + $0x70] sm:$0xf0]  ;;  %v1761_v54 = vld [vmem:[#allocation5 + $0x2c] sm:$0xf0]  ;;  %v1762_v56 = vld [vmem:[#allocation5 + $0x34] sm:$0xf0] }
  0x3e   :  { %549 = vmatpush.bf16.msrb.mxu1 %v1458_v60  ;;  %v1298_v57 = vor.u32 %v1765_v47, %v1295_v48  ;;  %v1758_v58 = vld [vmem:[#allocation5 + $0x1c] sm:$0xf]  ;;  %v1757_v60 = vld [vmem:[#allocation5 + $0x14] sm:$0xf]  ;;  %v1262_v62 = vor.u32 %v1761_v54, %v1261_v51  ;;  %v1270_v63 = vor.u32 %v1762_v56, %v1269_v55  ;;  %v1842_v3 = vld [vmem:[#allocation8 + $0xb8] sm:$0xff]  ;;  %s2029_s15 = smov [#allocation10]  }
  0x3f   :  { %v1271_v59 = vld [vmem:[#allocation5 + $0x38] sm:$0xf0]  ;;  %v1263_v61 = vld [vmem:[#allocation5 + $0x30] sm:$0xf0]  ;;  %v1850_v6 = vld [vmem:[#allocation8 + $0xf8] sm:$0xff]  ;;  %s1229_s16 = sshll.u32 %s2029_s15, 4  ;;  %s1230_s16 = int_to_ptr.vmem [resolvable:$true] %s1229_s16 }
  0x40   :  { %537 = vmatpush.bf16.msrb.mxu0 %v1422_v1  ;;  %563 = vmatpush.bf16.msrb.mxu2 %v1430_v2  ;;  %v1274_v0 = vor.u32 %v1758_v58, %v1271_v59  ;;  %v1826_v1 = vld [vmem:[#allocation8 + $0x38] sm:$0xff]  ;;  %v1266_v2 = vor.u32 %v1757_v60, %v1263_v61  ;;  %v1825_v5 = vld [vmem:[#allocation8 + $0x30] sm:$0xff]  ;;  %v1824_v9 = vld [vmem:[#allocation8 + $0x28] sm:$0xff]  ;;  %s1231_s19 = sshll.u32 %s2103_s5, 4  ;;  %s1232_s19 = int_to_ptr.hbm [resolvable:$true] %s1231_s19 }
  0x41   :  { %576 = vmatpush.bf16.msrb.mxu3 %v1434_v4  ;;  %v1834_v4 = vld [vmem:[#allocation8 + $0x78] sm:$0xff]  ;;  %v1841_v7 = vld [vmem:[#allocation8 + $0xb0] sm:$0xff]  ;;  %v1840_v11 = vld [vmem:[#allocation8 + $0xa8] sm:$0xff] }
  0x42   :  { %550 = vmatpush.bf16.msrb.mxu1 %v1426_v8  ;;  %v1833_v8 = vld [vmem:[#allocation8 + $0x70] sm:$0xff]  ;;  %v1832_v12 = vld [vmem:[#allocation8 + $0x68] sm:$0xff]  ;;  %v1839_v15 = vld [vmem:[#allocation8 + $0xa0] sm:$0xff] }
  0x43   :  { %v1849_v10 = vld [vmem:[#allocation8 + $0xf0] sm:$0xff]  ;;  %v1822_v17 = vld [vmem:[#allocation8 + $0x18] sm:$0xff]  ;;  %v1820_v24 = vld [vmem:[#allocation8 + $0x8] sm:$0xff] }
  0x44   :  { %538 = vmatpush.bf16.msrb.mxu0 %v1390_v13  ;;  %564 = vmatpush.bf16.msrb.mxu2 %v1398_v14  ;;  %v1823_v13 = vld [vmem:[#allocation8 + $0x20] sm:$0xff]  ;;  %v1848_v14 = vld [vmem:[#allocation8 + $0xe8] sm:$0xff]  ;;  %v1838_v18 = vld [vmem:[#allocation8 + $0x98] sm:$0xff] }
  0x45   :  { %577 = vmatpush.bf16.msrb.mxu3 %v1402_v16  ;;  %v1831_v16 = vld [vmem:[#allocation8 + $0x60] sm:$0xff]  ;;  %v1830_v19 = vld [vmem:[#allocation8 + $0x58] sm:$0xff]  ;;  %v1837_v22 = vld [vmem:[#allocation8 + $0x90] sm:$0xff] }
  0x46   :  { %551 = vmatpush.bf16.msrb.mxu1 %v1394_v20  ;;  %v1821_v20 = vld [vmem:[#allocation8 + $0x10] sm:$0xff]  ;;  %v1846_v21 = vld [vmem:[#allocation8 + $0xd8] sm:$0xff]  ;;  %v1828_v27 = vld [vmem:[#allocation8 + $0x48] sm:$0xff] }
  0x47   :  { %v1829_v23 = vld [vmem:[#allocation8 + $0x50] sm:$0xff]  ;;  %v1858_v29 = vld [vmem:[#allocation8 + $0x138] sm:$0xff]  ;;  %v1844_v30 = vld [vmem:[#allocation8 + $0xc8] sm:$0xff] }
  0x48   :  { %539 = vmatpush.bf16.msrb.mxu0 %v1358_v25  ;;  %565 = vmatpush.bf16.msrb.mxu2 %v1366_v26  ;;  %v1845_v25 = vld [vmem:[#allocation8 + $0xd0] sm:$0xff]  ;;  %v1836_v26 = vld [vmem:[#allocation8 + $0x88] sm:$0xff]  ;;  %v1835_v31 = vld [vmem:[#allocation8 + $0x80] sm:$0xff] }
  0x49   :  { %578 = vmatpush.bf16.msrb.mxu3 %v1370_v28  ;;  %v1819_v28 = vld [vmem:[#allocation8] sm:$0xff]  ;;  %v1866_v33 = vld [vmem:[#allocation8 + $0x178] sm:$0xff]  ;;  %v1857_v34 = vld [vmem:[#allocation8 + $0x130] sm:$0xff] }
  0x4a   :  { %552 = vmatpush.bf16.msrb.mxu1 %v1362_v32  ;;  %v1827_v32 = vld [vmem:[#allocation8 + $0x40] sm:$0xff]  ;;  %v1865_v36 = vld [vmem:[#allocation8 + $0x170] sm:$0xff]  ;;  %v1856_v39 = vld [vmem:[#allocation8 + $0x128] sm:$0xff] }
  0x4b   :  { %v1843_v35 = vld [vmem:[#allocation8 + $0xc0] sm:$0xff]  ;;  %v1873_v41 = vld [vmem:[#allocation8 + $0x1b0] sm:$0xff]  ;;  %v1872_v45 = vld [vmem:[#allocation8 + $0x1a8] sm:$0xff] }
  0x4c   :  { %540 = vmatpush.bf16.msrb.mxu0 %v1326_v37  ;;  %566 = vmatpush.bf16.msrb.mxu2 %v1334_v38  ;;  %v1874_v37 = vld [vmem:[#allocation8 + $0x1b8] sm:$0xff]  ;;  %v1881_v42 = vld [vmem:[#allocation8 + $0x1f0] sm:$0xff]  ;;  %v1855_v43 = vld [vmem:[#allocation8 + $0x120] sm:$0xff] }
  0x4d   :  { %579 = vmatpush.bf16.msrb.mxu3 %v1338_v40  ;;  %v1882_v38 = vld [vmem:[#allocation8 + $0x1f8] sm:$0xff]  ;;  %v1864_v40 = vld [vmem:[#allocation8 + $0x168] sm:$0xff]  ;;  %v1853_v51 = vld [vmem:[#allocation8 + $0x110] sm:$0xff] }
  0x4e   :  { %553 = vmatpush.bf16.msrb.mxu1 %v1330_v44  ;;  %v1863_v44 = vld [vmem:[#allocation8 + $0x160] sm:$0xff]  ;;  %v1880_v46 = vld [vmem:[#allocation8 + $0x1e8] sm:$0xff]  ;;  %v1854_v47 = vld [vmem:[#allocation8 + $0x118] sm:$0xff] }
  0x4f   :  { %v1862_v48 = vld [vmem:[#allocation8 + $0x158] sm:$0xff]  ;;  %v1852_v56 = vld [vmem:[#allocation8 + $0x108] sm:$0xff]  ;;  %v1869_v60 = vld [vmem:[#allocation8 + $0x190] sm:$0xff] }
  0x50   :  { %541 = vmatpush.bf16.msrb.mxu0 %v1294_v49  ;;  %567 = vmatpush.bf16.msrb.mxu2 %v1302_v50  ;;  %v1871_v49 = vld [vmem:[#allocation8 + $0x1a0] sm:$0xff]  ;;  %v1870_v54 = vld [vmem:[#allocation8 + $0x198] sm:$0xff]  ;;  %v1860_v59 = vld [vmem:[#allocation8 + $0x148] sm:$0xff] }
  0x51   :  { %580 = vmatpush.bf16.msrb.mxu3 %v1306_v53  ;;  %v1879_v50 = vld [vmem:[#allocation8 + $0x1e0] sm:$0xff]  ;;  %v1861_v53 = vld [vmem:[#allocation8 + $0x150] sm:$0xff]  ;;  %v1878_v55 = vld [vmem:[#allocation8 + $0x1d8] sm:$0xff] }
  0x52   :  { %554 = vmatpush.bf16.msrb.mxu1 %v1298_v57  ;;  %v2082_v57 = vld [vmem:[#allocation7] sm:$0xff]  ;;  %v1877_v61 = vld [vmem:[#allocation8 + $0x1d0] sm:$0xff] }
  0x53   :  { %v147_v58 = vperm.slane %v2082_v57, 0 }
  0x54   :  { %542 = vmatpush.bf16.msrb.mxu0 %v1262_v62  ;;  %568 = vmatpush.bf16.msrb.mxu2 %v1270_v63  ;;  %v148_v62 = vperm.slane %v2082_v57, 1  ;;  %v1851_v63 = vld [vmem:[#allocation8 + $0x100] sm:$0xff] }
  0x55   :  { %581 = vmatpush.bf16.msrb.mxu3 %v1274_v0 }
  0x56   :  { %555 = vmatpush.bf16.msrb.mxu1 %v1266_v2  ;;  %v1859_v2 = vld [vmem:[#allocation8 + $0x140] sm:$0xff] }
  0x57   :  { %543 = vmatmul.bf16.vlgmr.msrb.gmra.mxu0 %v2072_v52  ;;  %569 = vmatmul.bf16.vlgmr.msrb.gmra.mxu2 %v2072_v52 }
  0x58   :  { %1119 = vmatpush.bf16.msra.mxu0 %v1826_v1  ;;  %1145 = vmatpush.bf16.msra.mxu2 %v1842_v3  ;;  %v1868_v3 = vld [vmem:[#allocation8 + $0x188] sm:$0xff] }
  0x59   :  { %582 = vmatmul.bf16.vlgmr.msrb.gmra.mxu3 %v2072_v52  ;;  %556 = vmatmul.bf16.vlgmr.msrb.gmra.mxu1 %v2072_v52  ;;  %v1847_v52 = vld [vmem:[#allocation8 + $0xe0] sm:$0xff] }
  0x5a   :  { %1132 = vmatpush.bf16.msra.mxu1 %v1834_v4  ;;  %1158 = vmatpush.bf16.msra.mxu3 %v1850_v6  ;;  %v1876_v4 = vld [vmem:[#allocation8 + $0x1c8] sm:$0xff] }
  0x5c   :  { %1120 = vmatpush.bf16.msra.mxu0 %v1825_v5  ;;  %1146 = vmatpush.bf16.msra.mxu2 %v1841_v7  ;;  %v149_v5 = vperm.slane %v2082_v57, 2  ;;  %v150_v7 = vperm.slane %v2082_v57, 3 }
  0x5e   :  { %1133 = vmatpush.bf16.msra.mxu1 %v1833_v8  ;;  %1159 = vmatpush.bf16.msra.mxu3 %v1849_v10 }
  0x60   :  { %1121 = vmatpush.bf16.msra.mxu0 %v1824_v9  ;;  %1147 = vmatpush.bf16.msra.mxu2 %v1840_v11 }
  0x62   :  { %1134 = vmatpush.bf16.msra.mxu1 %v1832_v12  ;;  %1160 = vmatpush.bf16.msra.mxu3 %v1848_v14  ;;  %v1875_v14 = vld [vmem:[#allocation8 + $0x1c0] sm:$0xff] }
  0x64   :  { %1122 = vmatpush.bf16.msra.mxu0 %v1823_v13  ;;  %1148 = vmatpush.bf16.msra.mxu2 %v1839_v15  ;;  %v1867_v13 = vld [vmem:[#allocation8 + $0x180] sm:$0xff] }
  0x66   :  { %1135 = vmatpush.bf16.msra.mxu1 %v1831_v16  ;;  %1161 = vmatpush.bf16.msra.mxu3 %v1847_v52 }
  0x68   :  { %1123 = vmatpush.bf16.msra.mxu0 %v1822_v17  ;;  %1149 = vmatpush.bf16.msra.mxu2 %v1838_v18 }
  0x6a   :  { %1136 = vmatpush.bf16.msra.mxu1 %v1830_v19  ;;  %1162 = vmatpush.bf16.msra.mxu3 %v1846_v21 }
  0x6c   :  { %1124 = vmatpush.bf16.msra.mxu0 %v1821_v20  ;;  %1150 = vmatpush.bf16.msra.mxu2 %v1837_v22 }
  0x6e   :  { %1137 = vmatpush.bf16.msra.mxu1 %v1829_v23  ;;  %1163 = vmatpush.bf16.msra.mxu3 %v1845_v25 }
  0x70   :  { %1125 = vmatpush.bf16.msra.mxu0 %v1820_v24  ;;  %1151 = vmatpush.bf16.msra.mxu2 %v1836_v26  ;;  %v151_v26 = vperm.slane %v2082_v57, 4 }
  0x72   :  { %1138 = vmatpush.bf16.msra.mxu1 %v1828_v27  ;;  %1164 = vmatpush.bf16.msra.mxu3 %v1844_v30  ;;  %v152_v27 = vperm.slane %v2082_v57, 5 }
  0x74   :  { %1126 = vmatpush.bf16.msra.mxu0 %v1819_v28  ;;  %1152 = vmatpush.bf16.msra.mxu2 %v1835_v31 }
  0x76   :  { %1139 = vmatpush.bf16.msra.mxu1 %v1827_v32  ;;  %1165 = vmatpush.bf16.msra.mxu3 %v1843_v35 }
  0x78   :  { %1171 = vmatpush.bf16.msrb.mxu0 %v1858_v29  ;;  %1197 = vmatpush.bf16.msrb.mxu2 %v1874_v37 }
  0x7a   :  { %1184 = vmatpush.bf16.msrb.mxu1 %v1866_v33  ;;  %1210 = vmatpush.bf16.msrb.mxu3 %v1882_v38  ;;  %v153_v33 = vperm.slane %v2082_v57, 6 }
  0x7c   :  { %1172 = vmatpush.bf16.msrb.mxu0 %v1857_v34  ;;  %1198 = vmatpush.bf16.msrb.mxu2 %v1873_v41  ;;  %v154_v34 = vperm.slane %v2082_v57, 7  ;;  %v1892_v57 = vld [vmem:[%s2102_s4] ss:$0 sm:$0xff] }
  0x7e   :  { %1185 = vmatpush.bf16.msrb.mxu1 %v1865_v36  ;;  %1211 = vmatpush.bf16.msrb.mxu3 %v1881_v42 }
  0x80   :  { %1173 = vmatpush.bf16.msrb.mxu0 %v1856_v39  ;;  %1199 = vmatpush.bf16.msrb.mxu2 %v1872_v45 }
  0x82   :  { %1186 = vmatpush.bf16.msrb.mxu1 %v1864_v40  ;;  %1212 = vmatpush.bf16.msrb.mxu3 %v1880_v46 }
  0x84   :  { %1174 = vmatpush.bf16.msrb.mxu0 %v1855_v43  ;;  %1200 = vmatpush.bf16.msrb.mxu2 %v1871_v49 }
  0x86   :  { %1187 = vmatpush.bf16.msrb.mxu1 %v1863_v44  ;;  %1213 = vmatpush.bf16.msrb.mxu3 %v1879_v50 }
  0x88   :  { %1175 = vmatpush.bf16.msrb.mxu0 %v1854_v47  ;;  %1201 = vmatpush.bf16.msrb.mxu2 %v1870_v54 }
  0x8a   :  { %1188 = vmatpush.bf16.msrb.mxu1 %v1862_v48  ;;  %1214 = vmatpush.bf16.msrb.mxu3 %v1878_v55 }
  0x8c   :  { %1176 = vmatpush.bf16.msrb.mxu0 %v1853_v51  ;;  %1202 = vmatpush.bf16.msrb.mxu2 %v1869_v60 }
  0x8e   :  { %1189 = vmatpush.bf16.msrb.mxu1 %v1861_v53  ;;  %1215 = vmatpush.bf16.msrb.mxu3 %v1877_v61 }
  0x90   :  { %1177 = vmatpush.bf16.msrb.mxu0 %v1852_v56  ;;  %1203 = vmatpush.bf16.msrb.mxu2 %v1868_v3 }
  0x92   :  { %1190 = vmatpush.bf16.msrb.mxu1 %v1860_v59  ;;  %1216 = vmatpush.bf16.msrb.mxu3 %v1876_v4 }
  0x94   :  { %1178 = vmatpush.bf16.msrb.mxu0 %v1851_v63  ;;  %1204 = vmatpush.bf16.msrb.mxu2 %v1867_v13 }
  0x96   :  { %1191 = vmatpush.bf16.msrb.mxu1 %v1859_v2  ;;  %1217 = vmatpush.bf16.msrb.mxu3 %v1875_v14 }
  0xb4   :  { %v492_v0 = vpop.f32.mrf.mxu0 }
  0xb5   :  { %v493_v1 = vadd.f32 %v492_v0, %v147_v58 }
  0xb6   :  { %v505_v6 = vpop.f32.mrf.mxu1 }
  0xb7   :  { %v587_v8 = vmax.f32 %v493_v1, 0.0  ;;  %v506_v9 = vadd.f32 %v505_v6, %v148_v62 }
  0xb9   :  { %v595_v11 = vpack.c.bf16 %v587_v8, %v587_v8  ;;  %v588_v12 = vmax.f32 %v506_v9, 0.0 }
  0xba   :  { %v518_v10 = vpop.f32.mrf.mxu2 }
  0xbb   :  { %v519_v15 = vadd.f32 %v518_v10, %v149_v5  ;;  %v596_v52 = vpack.c.bf16 %v588_v12, %v588_v12  ;;  %1127 = vmatmul.bf16.vlgmr.msra.gmra.mxu0 %v595_v11 }
  0xbc   :  { %v494_v19 = vpop.f32.mrf.mxu0 }
  0xbd   :  { %v531_v16 = vpop.f32.mrf.mxu3  ;;  %v589_v18 = vmax.f32 %v519_v15, 0.0  ;;  %1140 = vmatmul.bf16.vlgmr.msra.gmra.mxu1 %v596_v52 }
  0xbe   :  { %v532_v17 = vadd.f32 %v531_v16, %v150_v7  ;;  %v507_v22 = vpop.f32.mrf.mxu1 }
  0xbf   :  { %v597_v21 = vpack.c.bf16 %v589_v18, %v589_v18 }
  0xc0   :  { %v590_v20 = vmax.f32 %v532_v17, 0.0 }
  0xc1   :  { %1153 = vmatmul.bf16.vlgmr.msra.gmra.mxu2 %v597_v21 }
  0xc2   :  { %v598_v23 = vpack.c.bf16 %v590_v20, %v590_v20  ;;  %v520_v24 = vpop.f32.mrf.mxu2 }
  0xc4   :  { %1166 = vmatmul.bf16.vlgmr.msra.gmra.mxu3 %v598_v23 }
  0xc5   :  { %v533_v25 = vpop.f32.mrf.mxu3 }
  0xd4   :  { %v544_v28 = vpop.f32.mrf.mxu0 }
  0xd5   :  { %v545_v29 = vadd.f32 %v544_v28, %v151_v26 }
  0xd6   :  { %v557_v30 = vpop.f32.mrf.mxu1 }
  0xd7   :  { %v591_v31 = vmax.f32 %v545_v29, 0.0  ;;  %v558_v32 = vadd.f32 %v557_v30, %v152_v27 }
  0xd9   :  { %v599_v35 = vpack.c.bf16 %v591_v31, %v591_v31  ;;  %v592_v36 = vmax.f32 %v558_v32, 0.0 }
  0xda   :  { %v570_v37 = vpop.f32.mrf.mxu2 }
  0xdb   :  { %v600_v38 = vpack.c.bf16 %v592_v36, %v592_v36  ;;  %v571_v39 = vadd.f32 %v570_v37, %v153_v33  ;;  %1179 = vmatmul.bf16.vlgmr.msrb.gmra.mxu0 %v599_v35 }
  0xdc   :  { %v583_v40 = vpop.f32.mrf.mxu3  ;;  %v546_v42 = vpop.f32.mrf.mxu0 }
  0xdd   :  { %v584_v41 = vadd.f32 %v583_v40, %v154_v34  ;;  %v593_v43 = vmax.f32 %v571_v39, 0.0  ;;  %1192 = vmatmul.bf16.vlgmr.msrb.gmra.mxu1 %v600_v38 }
  0xde   :  { %v559_v45 = vpop.f32.mrf.mxu1 }
  0xdf   :  { %v594_v44 = vmax.f32 %v584_v41, 0.0  ;;  %v601_v46 = vpack.c.bf16 %v593_v43, %v593_v43 }
  0xe1   :  { %v602_v47 = vpack.c.bf16 %v594_v44, %v594_v44  ;;  %1205 = vmatmul.bf16.vlgmr.msrb.gmra.mxu2 %v601_v46 }
  0xe2   :  { %v572_v48 = vpop.f32.mrf.mxu2 }
  0xe3   :  { %1218 = vmatmul.bf16.vlgmr.msrb.gmra.mxu3 %v602_v47 }
  0xe4   :  { %v585_v49 = vpop.f32.mrf.mxu3 }
 0x138   :  { %v1128_v50 = vpop.f32.mrf.mxu0 }
 0x139   :  { %v1129_v60 = vadd.f32 %v1892_v57, %v1128_v50 }
 0x13a   :  { %v1141_v51 = vpop.f32.mrf.mxu1 }
 0x13b   :  { %v1142_v61 = vadd.f32 %v1141_v51, %v1129_v60 }
 0x140   :  { %v1130_v53 = vpop.f32.mrf.mxu0 }
 0x142   :  { %v1143_v54 = vpop.f32.mrf.mxu1 }
 0x144   :  { %v1154_v55 = vpop.f32.mrf.mxu2 }
 0x145   :  { %v1155_v63 = vadd.f32 %v1154_v55, %v1142_v61 }
 0x147   :  { %v1167_v56 = vpop.f32.mrf.mxu3 }
 0x148   :  { %v1168_v1 = vadd.f32 %v1167_v56, %v1155_v63 }
 0x14c   :  { %v1156_v58 = vpop.f32.mrf.mxu2 }
 0x14f   :  { %v1169_v59 = vpop.f32.mrf.mxu3 }
 0x158   :  { %v1180_v62 = vpop.f32.mrf.mxu0 }
 0x159   :  { %v1181_v2 = vadd.f32 %v1180_v62, %v1168_v1 }
 0x15a   :  { %v1193_v0 = vpop.f32.mrf.mxu1 }
 0x15b   :  { %v1194_v5 = vadd.f32 %v1193_v0, %v1181_v2 }
 0x160   :  { %v1182_v3 = vpop.f32.mrf.mxu0 }
 0x162   :  { %v1195_v4 = vpop.f32.mrf.mxu1 }
 0x164   :  { %v1206_v6 = vpop.f32.mrf.mxu2 }
 0x165   :  { %v1207_v7 = vadd.f32 %v1206_v6, %v1194_v5 }
 0x166   :  { %v1219_v8 = vpop.f32.mrf.mxu3 }
 0x167   :  { %v1220_v9 = vadd.f32 %v1219_v8, %v1207_v7 }
 0x169   :  { %1223 = vst [vmem:[#allocation10] sm:$0xff] %v1220_v9 }
 0x16a   :  { %1234 = dma.vmem_to_hbm [thread:$0]  %s1230_s16, 128, %s1232_s19, [#allocation4]  }
 0x16c   :  { %v1208_v10 = vpop.f32.mrf.mxu2 }
 0x16e   :  { %v1221_v11 = vpop.f32.mrf.mxu3 }
 0x16f   :  { %2019 = dma.done.wait [#allocation4], 128  }
 0x170   :  { %2020 = vsyncadd [#allocation4], 4294967168 }
 0x171   :  { %1239 = vsyncpa [#allocation3], 1 }
 0x172   :  { %1240 = vsyncpa [#allocation6], 1 }
 0x173   :  { %1241 = vsyncpa [#allocation9], 1 }
 0x174   :  { %1242 = vsyncpa [#allocation4], 1 }

</bundles_post_ra>
